<compile_context>
chip_gen: v6e
topology: v6e:2x2x1
jax: 0.10.0
libtpu: 0.0.40
codegen_flags: <defaults>
</compile_context>

<pallas_src>
import functools

import jax
import jax.numpy as jnp
from jax.experimental import pallas as pl
from jax.experimental.pallas import tpu as pltpu


def _gamma_kernel(params_ref, ut_ref, it_ref, rowid_ref, uidx_ref, iidx_ref,
                  o_ref, *, smin):
    # params_ref: SMEM (3,) float32 -> a, b, c (Gamma's nn.Parameter scalars).
    a = params_ref[0]
    b = params_ref[1]
    c = params_ref[2]

    n_users = ut_ref.shape[1]
    n_items = it_ref.shape[1]

    u_idx = uidx_ref[...]   # (1, tile_n) int32, batch rides the 128-lane axis
    i_idx = iidx_ref[...]   # (1, tile_n) int32

    # Fused embedding gather: exact one-hot selection matmul on the MXU.
    # rowid_ref is a constant, VMEM-resident row-id plane (constant index_map
    # -> fetched once, never regenerated per step).  One-hots are built in the
    # table dtype (bf16) so the MXU sees bf16 x bf16 with f32 accumulation —
    # bit-exact because the weights are 0/1 and the table values are already
    # bf16-representable.
    tdt = ut_ref.dtype
    onehot_u = (rowid_ref[0:n_users, :] == u_idx).astype(tdt)  # (n_users, tile_n)
    onehot_i = (rowid_ref[0:n_items, :] == i_idx).astype(tdt)  # (n_items, tile_n)

    u_emb = jnp.dot(ut_ref[...], onehot_u,
                    preferred_element_type=jnp.float32)         # (D, tile_n) f32
    i_emb = jnp.dot(it_ref[...], onehot_i,
                    preferred_element_type=jnp.float32)         # (D, tile_n) f32

    # scores = model.forward_pair(u, i): per-pair dot product.  Sublane reduce
    # over D keeps the batch on the lane axis -> lane-dense (1, tile_n) output
    # slab (unmasked vst except on the ragged tail block).
    scores = jnp.sum(u_emb * i_emb, axis=0, keepdims=True)       # (1, tile_n)

    # transform_score: sigmoid(a*log(s - smin) + b*(s - smin) + c).
    # No clamp: matches the PyTorch module exactly (incl. -inf/NaN if scores
    # were ever <= smin).  Garbage tail lanes of the last block are dropped by
    # the out-of-bounds store, so they never reach HBM.
    s = scores - smin
    o_ref[...] = jax.nn.sigmoid(a * jnp.log(s) + b * s + c)


def _pick_tile_n(N, n_users, n_items, D, requested, vmem_budget_bytes=24 << 20):
    """Pick the largest lane tile that (a) fits a conservative VMEM budget
    (24 MiB -> inside the 32 MiB scoped default on all generations, well under
    v7x's 64 MiB physical VMEM) and (b) keeps the grid >= 2 steps so v7x's two
    TensorCores both get work (no effect on single-TC v5e/v6e)."""
    max_rows = max(n_users, n_items)
    per_lane_bytes = (
        (n_users + n_items) * 2      # bf16 one-hots
        + 2 * max_rows * 4           # resident int32 row-id plane (2 buffers)
        + 2 * D * 4                  # two f32 gathered-embedding slabs
        + 2 * 2 * 4 + 2 * 4          # double-buffered idx inputs + output
        + 16                         # (1, tile_n) f32 temporaries
    )
    fit = max(128, (vmem_budget_bytes // per_lane_bytes) // 128 * 128)
    tile_n = min(int(requested), int(fit))
    if N > 128:
        # Shrink the tile rather than collapsing to a single grid step.
        two_step = max(128, pl.cdiv(pl.cdiv(N, 2), 128) * 128)
        tile_n = min(tile_n, int(two_step))
    return int(tile_n)


def gamma_forward(user_table, item_table, u_idx, i_idx, params, *, smin,
                  tile_n=32768):
    """Fused Gamma.forward for an MF pair scorer.

    user_table: (n_users, D), item_table: (n_items, D) (bf16 preferred),
    u_idx / i_idx: (N,) integer indices, params: (3,) f32 = [a, b, c].
    Returns (N, 1) float32 calibrated scores (matches PyTorch's (batch, 1)).
    """
    n_users, D = user_table.shape
    n_items, D2 = item_table.shape
    assert D == D2
    N = int(u_idx.shape[0])

    tile_n = _pick_tile_n(N, n_users, n_items, D, tile_n)
    grid = (pl.cdiv(N, tile_n),)

    # No padding / slicing copies: metadata-only reshapes, ragged tail handled
    # by Pallas partial blocks.
    u2 = u_idx.astype(jnp.int32).reshape(1, N)
    i2 = i_idx.astype(jnp.int32).reshape(1, N)

    # Tiny transposed tables: D on sublanes, entries on lanes; constant
    # index_map keeps them VMEM-resident across all grid steps.
    ut = user_table.T   # (D, n_users)
    it = item_table.T   # (D, n_items)

    # Constant row-id plane shared by both one-hot compares (hoists the
    # per-step broadcasted_iota out of the kernel body).
    max_rows = max(n_users, n_items)
    row_ids = jnp.broadcast_to(
        jnp.arange(max_rows, dtype=jnp.int32)[:, None], (max_rows, tile_n))

    kernel = functools.partial(_gamma_kernel, smin=float(smin))

    out = pl.pallas_call(
        kernel,
        out_shape=jax.ShapeDtypeStruct((1, N), jnp.float32),
        grid=grid,
        in_specs=[
            pl.BlockSpec(memory_space=pltpu.MemorySpace.SMEM),   # a, b, c
            pl.BlockSpec((D, n_users), lambda n: (0, 0)),        # user table^T (resident)
            pl.BlockSpec((D, n_items), lambda n: (0, 0)),        # item table^T (resident)
            pl.BlockSpec((max_rows, tile_n), lambda n: (0, 0)),  # row-id plane (resident)
            pl.BlockSpec((1, tile_n), lambda n: (0, n)),         # user indices (lanes)
            pl.BlockSpec((1, tile_n), lambda n: (0, n)),         # item indices (lanes)
        ],
        out_specs=pl.BlockSpec((1, tile_n), lambda n: (0, n)),   # lane-dense output
        compiler_params=pltpu.CompilerParams(
            dimension_semantics=("parallel",),
        ),
    )(params, ut, it, row_ids, u2, i2)

    # (1, N) -> (N, 1): same linear order, metadata-only reshape.
    return out.reshape(N, 1)


if __name__ == "__main__":
    key = jax.random.PRNGKey(0)
    k_u, k_i, k_uu, k_ii = jax.random.split(key, 4)

    # Small, deterministic setup.
    n_users, n_items, dim = 32, 16, 32
    batch = 1000  # not a tile multiple -> exercises the ragged-tail path

    # MF "model" tables (the injected self.model), stored in bf16 and consumed
    # directly by the MXU inside the kernel.
    user_table = (jax.random.normal(k_u, (n_users, dim), jnp.float32)
                  / jnp.sqrt(dim)).astype(jnp.bfloat16)
    item_table = (jax.random.normal(k_i, (n_items, dim), jnp.float32)
                  / jnp.sqrt(dim)).astype(jnp.bfloat16)

    # Pair indices (the forward input) — gather is fused into the kernel.
    u_idx = jax.random.randint(k_uu, (batch,), 0, n_users)
    i_idx = jax.random.randint(k_ii, (batch,), 0, n_items)

    # Gamma.__init__: a = b = c = 1.0, smin = smin_orig - shift.
    params = jnp.array([1.0, 1.0, 1.0], jnp.float32)
    smin_orig, shift = -5.0, 1.0
    smin = smin_orig - shift  # -6.0 -> scores - smin > 0 for log()

    out = gamma_forward(user_table, item_table, u_idx, i_idx, params,
                        smin=smin)
    out = jax.block_until_ready(out)

    # Reference check (pure JAX, f32 upcast of the same bf16 tables).
    u_emb = user_table.astype(jnp.float32)[u_idx]
    i_emb = item_table.astype(jnp.float32)[i_idx]
    scores_ref = jnp.sum(u_emb * i_emb, axis=-1, keepdims=True)
    s = scores_ref - smin
    ref = jax.nn.sigmoid(1.0 * jnp.log(s) + 1.0 * s + 1.0)
    assert out.shape == (batch, 1)
    assert jnp.allclose(out, ref, atol=1e-5, rtol=1e-5), float(
        jnp.max(jnp.abs(out - ref)))

    print("KERNEL_OK")
</pallas_src>

<mosaic_0001>
module attributes {stable_mosaic.version = 11 : i64} {
  func.func @_gamma_kernel(%arg0: i32, %arg1: memref<3xf32, #tpu.memory_space<smem>>, %arg2: memref<32x32xbf16, #tpu.memory_space<vmem>>, %arg3: memref<32x16xbf16, #tpu.memory_space<vmem>>, %arg4: memref<32x512xi32, #tpu.memory_space<vmem>>, %arg5: memref<1x512xi32, #tpu.memory_space<vmem>>, %arg6: memref<1x512xi32, #tpu.memory_space<vmem>>, %arg7: memref<1x512xf32, #tpu.memory_space<vmem>>) attributes {dimension_semantics = [#tpu.dimension_semantics<parallel>], iteration_bounds = array<i64: 2>, scalar_prefetch = 0 : i64, scratch_operands = 0 : i64, tpu.core_type = #tpu.core_type<tc>, window_params = [{transform_indices = @transform_0, window_bounds = array<i64: 3>}, {pipeline_mode = #tpu.pipeline_mode<synchronous>, transform_indices = @transform_1, window_bounds = array<i64: 32, 32>}, {pipeline_mode = #tpu.pipeline_mode<synchronous>, transform_indices = @transform_2, window_bounds = array<i64: 32, 16>}, {pipeline_mode = #tpu.pipeline_mode<synchronous>, transform_indices = @transform_3, window_bounds = array<i64: 32, 512>}, {transform_indices = @transform_4, window_bounds = array<i64: 1, 512>}, {transform_indices = @transform_5, window_bounds = array<i64: 1, 512>}, {transform_indices = @transform_6, window_bounds = array<i64: 1, 512>}]} {
    %c0 = arith.constant 0 : index
    %0 = memref.load %arg1[%c0] : memref<3xf32, #tpu.memory_space<smem>>
    %c1 = arith.constant 1 : index
    %1 = memref.load %arg1[%c1] : memref<3xf32, #tpu.memory_space<smem>>
    %c2 = arith.constant 2 : index
    %2 = memref.load %arg1[%c2] : memref<3xf32, #tpu.memory_space<smem>>
    %c0_0 = arith.constant 0 : index
    %c0_1 = arith.constant 0 : index
    %3 = vector.load %arg5[%c0_0, %c0_1] : memref<1x512xi32, #tpu.memory_space<vmem>>, vector<1x512xi32>
    %c0_2 = arith.constant 0 : index
    %c0_3 = arith.constant 0 : index
    %4 = vector.load %arg6[%c0_2, %c0_3] : memref<1x512xi32, #tpu.memory_space<vmem>>, vector<1x512xi32>
    %c0_4 = arith.constant 0 : index
    %c0_5 = arith.constant 0 : index
    %5 = vector.load %arg4[%c0_4, %c0_5] : memref<32x512xi32, #tpu.memory_space<vmem>>, vector<32x512xi32>
    %6 = vector.broadcast %3 : vector<1x512xi32> to vector<32x512xi32>
    %7 = arith.cmpi eq, %5, %6 : vector<32x512xi32>
    %8 = arith.extui %7 : vector<32x512xi1> to vector<32x512xi32>
    %9 = arith.sitofp %8 : vector<32x512xi32> to vector<32x512xf32>
    %10 = arith.truncf %9 : vector<32x512xf32> to vector<32x512xbf16>
    %c0_6 = arith.constant 0 : index
    %c0_7 = arith.constant 0 : index
    %11 = vector.load %arg4[%c0_6, %c0_7] : memref<32x512xi32, #tpu.memory_space<vmem>>, vector<16x512xi32>
    %12 = vector.broadcast %4 : vector<1x512xi32> to vector<16x512xi32>
    %13 = arith.cmpi eq, %11, %12 : vector<16x512xi32>
    %14 = arith.extui %13 : vector<16x512xi1> to vector<16x512xi32>
    %15 = arith.sitofp %14 : vector<16x512xi32> to vector<16x512xf32>
    %16 = arith.truncf %15 : vector<16x512xf32> to vector<16x512xbf16>
    %c0_8 = arith.constant 0 : index
    %c0_9 = arith.constant 0 : index
    %17 = vector.load %arg2[%c0_8, %c0_9] : memref<32x32xbf16, #tpu.memory_space<vmem>>, vector<32x32xbf16>
    %cst = arith.constant dense<0.000000e+00> : vector<32x512xf32>
    %18 = tpu.matmul %17, %10, %cst {dimension_numbers = #tpu.dot_dimension_numbers<[1], [0], [0], [1], [0, 0, 1, 1], [], []>} : vector<32x32xbf16>, vector<32x512xbf16>, vector<32x512xf32> -> vector<32x512xf32>
    %c0_10 = arith.constant 0 : index
    %c0_11 = arith.constant 0 : index
    %19 = vector.load %arg3[%c0_10, %c0_11] : memref<32x16xbf16, #tpu.memory_space<vmem>>, vector<32x16xbf16>
    %cst_12 = arith.constant dense<0.000000e+00> : vector<32x512xf32>
    %20 = tpu.matmul %19, %16, %cst_12 {dimension_numbers = #tpu.dot_dimension_numbers<[1], [0], [0], [1], [0, 0, 1, 1], [], []>} : vector<32x16xbf16>, vector<16x512xbf16>, vector<32x512xf32> -> vector<32x512xf32>
    %21 = arith.mulf %18, %20 : vector<32x512xf32>
    %cst_13 = arith.constant dense<0.000000e+00> : vector<512xf32>
    %22 = vector.multi_reduction <add>, %21, %cst_13 [0] : vector<32x512xf32> to vector<512xf32>
    %23 = vector.shape_cast %22 : vector<512xf32> to vector<1x512xf32>
    %cst_14 = arith.constant -6.000000e+00 : f32
    %24 = vector.broadcast %cst_14 : f32 to vector<1x512xf32>
    %25 = arith.subf %23, %24 : vector<1x512xf32>
    %26 = math.log %25 : vector<1x512xf32>
    %27 = vector.broadcast %0 : f32 to vector<1x512xf32>
    %28 = arith.mulf %27, %26 : vector<1x512xf32>
    %29 = vector.broadcast %1 : f32 to vector<1x512xf32>
    %30 = arith.mulf %29, %25 : vector<1x512xf32>
    %31 = arith.addf %28, %30 : vector<1x512xf32>
    %32 = vector.broadcast %2 : f32 to vector<1x512xf32>
    %33 = arith.addf %31, %32 : vector<1x512xf32>
    %34 = arith.negf %33 : vector<1x512xf32>
    %35 = math.exp %34 : vector<1x512xf32>
    %cst_15 = arith.constant 1.000000e+00 : f32
    %36 = vector.broadcast %cst_15 : f32 to vector<1x512xf32>
    %37 = arith.addf %36, %35 : vector<1x512xf32>
    %38 = arith.divf %36, %37 : vector<1x512xf32>
    %c0_16 = arith.constant 0 : index
    %c0_17 = arith.constant 0 : index
    %39 = vector.load %arg7[%c0_16, %c0_17] : memref<1x512xf32, #tpu.memory_space<vmem>>, vector<1x512xf32>
    tpu.vector_store %arg7[%c0_16, %c0_17], %38 {strides = array<i32>} : memref<1x512xf32, #tpu.memory_space<vmem>>, vector<1x512xf32>,
    return
  }
  func.func @transform_0(%arg0: i32) -> i32 {
    %c0_i32 = arith.constant 0 : i32
    %c0_i32_0 = arith.constant 0 : i32
    return %c0_i32 : i32
  }
  func.func @transform_1(%arg0: i32) -> (i32, i32) {
    %c0_i32 = arith.constant 0 : i32
    %c0_i32_0 = arith.constant 0 : i32
    %c0_i32_1 = arith.constant 0 : i32
    return %c0_i32, %c0_i32_0 : i32, i32
  }
  func.func @transform_2(%arg0: i32) -> (i32, i32) {
    %c0_i32 = arith.constant 0 : i32
    %c0_i32_0 = arith.constant 0 : i32
    %c0_i32_1 = arith.constant 0 : i32
    return %c0_i32, %c0_i32_0 : i32, i32
  }
  func.func @transform_3(%arg0: i32) -> (i32, i32) {
    %c0_i32 = arith.constant 0 : i32
    %c0_i32_0 = arith.constant 0 : i32
    %c0_i32_1 = arith.constant 0 : i32
    return %c0_i32, %c0_i32_0 : i32, i32
  }
  func.func @transform_4(%arg0: i32) -> (i32, i32) {
    %c0_i32 = arith.constant 0 : i32
    %c0_i32_0 = arith.constant 0 : i32
    return %c0_i32, %arg0 : i32, i32
  }
  func.func @transform_5(%arg0: i32) -> (i32, i32) {
    %c0_i32 = arith.constant 0 : i32
    %c0_i32_0 = arith.constant 0 : i32
    return %c0_i32, %arg0 : i32, i32
  }
  func.func @transform_6(%arg0: i32) -> (i32, i32) {
    %c0_i32 = arith.constant 0 : i32
    %c0_i32_0 = arith.constant 0 : i32
    return %c0_i32, %arg0 : i32, i32
  }
}

</mosaic_0001>

<bundles_post_ra>
// kernel: tpu_custom_call.1
= control target key start
LH: loop header
LB: loop body
LE: loop exit
PB: predicated region body
PF: predicated region fallthrough
CT: control target
= control target key end

     0   :  { %11 = vsyncpa [#allocation5], 0  ;;  %s1439_s0 = inlined_call_operand.vmem [shape: f32[3], index: 0, kind: input, shape index: {}]   ;;  %s1440_s1 = inlined_call_operand.vmem [shape: bf16[32,32], index: 1, kind: input, shape index: {}]   ;;  %s1441_s2 = inlined_call_operand.vmem [shape: bf16[32,16], index: 2, kind: input, shape index: {}]   ;;  %s1442_s3 = inlined_call_operand.hbm [shape: s32[32,512], index: 3, kind: input, shape index: {}]   ;;  %s1443_s4 = inlined_call_operand.vmem [shape: s32[1,1000], index: 4, kind: input, shape index: {}]   ;;  %s1444_s5 = inlined_call_operand.vmem [shape: s32[1,1000], index: 5, kind: input, shape index: {}]   ;;  %s1445_s6 = inlined_call_operand.hbm [shape: f32[1,1000], index: 6, kind: output, shape index: {}]  }
   0x1   :  { %12 = vsyncpa [#allocation3], 0 }
   0x2   :  { %13 = vsyncpa [#allocation4], 0 }
   0x3   :  { %15 = vsyncpa [#allocation4 + $0x1], 0  ;;  %s1277_s21 = smov 0   ;;  %s1279_s22 = smov 0  }
   0x4   :  { %s1281_s23 = smov 0   ;;  %s1283_s24 = smov 0  }
   0x5 LB: > { %s1298_s25 = sadd.s32 4294967295, %s1232_s24   ;;  %s943_s26 = sadd.s32 4294967294, %s1232_s24   ;;  %s1232_s24 = sphi %s1283_s24, %s1463_s24   ;;  %s1228_s23 = sphi %s1281_s23, %s1462_s23   ;;  %s1224_s22 = sphi %s1279_s22, %s1461_s22   ;;  %s1220_s21 = sphi %s1277_s21, %s1460_s21  }
   0x6   : > { %s1302_s27 = sadd.s32 1, %s1232_s24   ;;  %s164_s28 = sadd.s32 1, %s1228_s23 }
   0x7   : > { %s161_s29 = ssub.s32 %s1232_s24, %s1302_s27  ;;  %p174_p0 = scmp.ne.s32.totalorder %s1228_s23, %s1224_s22 }
   0x8   : > { %p162_p1 = scmp.eq.s32.totalorder %s161_s29, 0  ;;  %p175_p2 = scmp.eq.s32.totalorder %s1298_s25, 1 }
   0x9   : > { %p180_p3 = scmp.ne.s32.totalorder %s1224_s22, %s1220_s21  ;;  %p181_p4 = scmp.eq.s32.totalorder %s943_s26, 1 }
   0xa   : > { %s1313_s30 = scalar_select %p162_p1, %s1228_s23, %s164_s28  }
   0xb   : > { %p1315_p5 = por %p175_p2, %p174_p0  ;;  %p1319_p6 = por %p181_p4, %p180_p3 }
   0xc   : > { %p944_p7 = scmp.ge.s32.totalorder %s1232_s24, 1  ;;  %p188_p8 = scmp.lt.s32.totalorder %s1232_s24, 3 }
   0xd   : > { %s1449_s7 = scalar_select %p1315_p5, 1, 0 }
   0xe   : > { %s1450_s8 = scalar_select %p1319_p6, 1, 0 }
   0xf   : > { %p1446_p9 = scmp.eq.s32.totalorder %s1298_s25, 0  ;;  %p1326_p10 = pnand %p944_p7, %p188_p8 }
  0x10   : > { %s201_s12 = sshll.u32 %s1439_s0, 4  ;;  %s1234_s13 = smov [#allocation6]   ;;  %s202_s12 = int_to_ptr.vmem [resolvable:$true] %s201_s12 }
  0x11   : > { %s1451_s9 = scalar_select %p1326_p10, 1, 0 }
  0x12   : > { %p1040_p11 = pneg %p1326_p10  ;;  %s217_s14 = sshll.u32 %s1234_s13, 4  ;;  %s218_s14 = int_to_ptr.vmem [resolvable:$true] %s217_s14 }
  0x13   : > { %s1123_s16 = scalar_lea.vmem %s202_s12, 16  ;;  %p1131_p3 = scmp.lt.s32.totalorder %s202_s12, %s202_s12 }
  0x14   : > { %p1337_p12 = pnand %p1446_p9, %p1040_p11  ;;  %p1124_p13 = scmp.ne.s32.totalorder %s202_s12, %s1123_s16 }
  0x15   : > { %p1132_p4 = scmp.lt.s32.totalorder %s1123_s16, %s1123_s16 }
  0x16   : > { %p1125_p0 = pneg %p1337_p12 }
  0x17   : > { %p1133_p7 = por %p1132_p4, %p1131_p3 }
  0x18   : > { %p1126_p1 = pnand %p1125_p0, %p1124_p13 }
  0x1a   : > { %p1127_p2 = pneg %p1126_p1 }
  0x1c   : > { %p1134_p8 = pnand %p1133_p7, %p1127_p2 }
  0x1e   : > { %1137 = shalt.err (!%p1134_p8)
}
  0x1f   : > { %s1235_s17 = smov [#allocation2]   ;;  %s1149_s18 = scalar_lea.vmem %s218_s14, 2048 }
  0x20   : > { %1043 = dma.vmem_to_smem (!%p1337_p12), %s202_s12, 16, %s1235_s17, [#allocation5]  }
  0x21   : > { %p1150_p11 = scmp.ne.s32.totalorder %s218_s14, %s1149_s18  ;;  %p1157_p5 = scmp.lt.s32.totalorder %s218_s14, %s218_s14 }
  0x22   : > { %p1158_p10 = scmp.lt.s32.totalorder %s1149_s18, %s1149_s18 }
  0x23   : > { %p1152_p9 = pnand %p1150_p11, %p1125_p0 }
  0x24   : > { %p1159_p13 = por %p1158_p10, %p1157_p5 }
  0x25   : > { %p1153_p6 = pneg %p1152_p9 }
  0x27   : > { %p1160_p1 = pnand %p1159_p13, %p1153_p6 }
  0x29   : > { %1163 = shalt.err (!%p1160_p1)
}
  0x2a   : > { %s1236_s19 = smov 512   ;;  %s1237_s20 = smov 32  }
  0x2b   : > { %1046 = dma.hbm_to_vmem [thread:$0]  (!%p1337_p12), %s1442_s3, 2048, %s218_s14, [#allocation3], %s1236_s19, %s1236_s19, %s1237_s20  }
  0x2c   : > { %p1453_p2 = scmp.ne.s32.totalorder %s1451_s9, 0 }
  0x2d   : > { %p1454_p3 = scmp.eq.s32.totalorder (!%p1453_p2), %s1298_s25, 0 }
  0x2e   : > { %249 = sbr.rel (%p1453_p2) target bundleno = 394 (0x18a), region = 44 }
  0x33   : > { %1207 = dma.done.wait (%p1454_p3), [#allocation5], 16   ;;  %p1455_p9 = pmov %p1454_p3 }
  0x34   : > { %p1456_p5 = pmov %p1454_p3 }
  0x35   : > { %1209 = vsyncadd (%p1455_p9), [#allocation5], 4294967280 }
  0x36   : > { %1211 = dma.done.wait (%p1456_p5), [#allocation3], 2048   ;;  %p1457_p6 = pmov %p1454_p3 }
  0x38   : > { %1213 = vsyncadd (%p1457_p6), [#allocation3], 4294965248 }
  0x39   : > { %259 = sfence }
  0x3a   : > { %s952_s29 = sshll.u32 %s1298_s25, 2  ;;  %v320_v0 = vlaneseq  ;;  %v1238_v2 = vmov 0   ;;  %v313_v3 = vld [vmem:[#allocation6 + $0x48] sm:$0xff]  ;;  %v315_v6 = vld [vmem:[#allocation6 + $0x58] sm:$0xff]  ;;  %v312_v11 = vld [vmem:[#allocation6 + $0x40] sm:$0xff]  ;;  %s954_s9 = sld [smem:[#allocation2 + $0x1]] }
  0x3b   : > { %p288_p10 = scmp.lt.s32.totalorder %s952_s29, 7  ;;  %497 = vmatprep.mubr.bf16.mxu0 %v1238_v2  ;;  %550 = vmatprep.mubr.bf16.mxu1 %v1238_v2  ;;  %v317_v4 = vld [vmem:[#allocation6 + $0x68] sm:$0xff]  ;;  %v319_v7 = vld [vmem:[#allocation6 + $0x78] sm:$0xff]  ;;  %v316_v12 = vld [vmem:[#allocation6 + $0x60] sm:$0xff]  ;;  %v1239_v27 = vmov 1.0|1.0  }
  0x3c   : > { %v1362_v1 = vshrl.u32 %v320_v0, 7  ;;  %v314_v13 = vld [vmem:[#allocation6 + $0x50] sm:$0xff]  ;;  %v305_v16 = vld [vmem:[#allocation6 + $0x8] sm:$0xff]  ;;  %v307_v22 = vld [vmem:[#allocation6 + $0x18] sm:$0xff]  ;;  %s955_s10 = sld [smem:[#allocation2 + $0x2]]  ;;  %s1029_s13 = sshll.u32 %s1298_s25, 6 }
  0x3d   : > { %s1465_s29 = smov (!%p288_p10, %s952_s29), 7  ;;  %v318_v14 = vld [vmem:[#allocation6 + $0x70] sm:$0xff]  ;;  %v309_v17 = vld [vmem:[#allocation6 + $0x28] sm:$0xff]  ;;  %v311_v24 = vld [vmem:[#allocation6 + $0x38] sm:$0xff]  ;;  %s852_s18 = scalar_lea.hbm %s1445_s6, %s1029_s13 }
  0x3e   : > { %v326_v5 = vsub.s32 1, %v1362_v1  ;;  %v334_v8 = vsub.s32 3, %v1362_v1  ;;  %v322_v9 = vsub.s32 0, %v1362_v1  ;;  %v330_v10 = vsub.s32 2, %v1362_v1  ;;  %s290_s11 = scalar_lea.vmem %s1443_s4, %s1465_s29  ;;  %s295_s14 = scalar_lea.vmem %s1444_s5, %s1465_s29  ;;  %v304_v25 = vld [vmem:[#allocation6] sm:$0xff]  ;;  %v306_v28 = vld [vmem:[#allocation6 + $0x10] sm:$0xff] }
  0x3f   : > { %v302_v15 = vld [vmem:[%s290_s11] sm:$0xf]  ;;  %v310_v29 = vld [vmem:[#allocation6 + $0x30] sm:$0xff]  ;;  %v1096_v35 = vld [vmem:[%s1440_s1 + $0x8] sm:$0xff]   ;;  %s299_s29 = sld [smem:[#allocation2]]  ;;  %s284_s11 = sand.u32 1, %s1224_s22  }
  0x40   : > { %v327_v18 = vrot.slane %v302_v15, %v326_v5  ;;  %v335_v19 = vrot.slane %v302_v15, %v334_v8  ;;  %v323_v20 = vrot.slane %v302_v15, %v322_v9  ;;  %v331_v21 = vrot.slane %v302_v15, %v330_v10  ;;  %v303_v23 = vld [vmem:[%s295_s14] sm:$0xf]  ;;  %v1098_v37 = vld [vmem:[%s1441_s2 + $0x8] sm:$0xff]   ;;  %s951_s12 = sshll.u32 %s284_s11, 2  ;;  %s840_s19 = scalar_lea.sflag [#allocation4], %s284_s11 }
  0x41   : > { %v308_v26 = vld [vmem:[#allocation6 + $0x20] sm:$0xff]  ;;  %v407_v30 = vrot.slane %v303_v23, %v326_v5  ;;  %v415_v31 = vrot.slane %v303_v23, %v334_v8  ;;  %v403_v32 = vrot.slane %v303_v23, %v322_v9  ;;  %v411_v33 = vrot.slane %v303_v23, %v330_v10  ;;  %s286_s14 = scalar_lea.vmem [#allocation7], %s951_s12  ;;  %p1458_p0 = scmp.ne.s32.totalorder %s1449_s7, 0 }
  0x42   : > { %vm345_vm0 = vcmp.eq.s32.totalorder %v313_v3, %v327_v18  ;;  %vm349_vm1 = vcmp.eq.s32.totalorder %v317_v4, %v327_v18  ;;  %vm347_vm2 = vcmp.eq.s32.totalorder %v315_v6, %v335_v19  ;;  %vm351_vm3 = vcmp.eq.s32.totalorder %v319_v7, %v335_v19  ;;  %v1095_v34 = vld [vmem:[%s1440_s1] sm:$0xff]   ;;  %s854_s15 = sshll.u32 %s286_s14, 4  ;;  %s1241_s26 = smov [#allocation7]   ;;  %s855_s15 = int_to_ptr.vmem [resolvable:$true] %s854_s15 }
  0x43   : > { %vm982_vm4 = vmpackc.low %vm349_vm1, %vm345_vm0  ;;  %vm344_vm5 = vcmp.eq.s32.totalorder %v312_v11, %v323_v20  ;;  %vm348_vm6 = vcmp.eq.s32.totalorder %v316_v12, %v323_v20  ;;  %vm346_vm7 = vcmp.eq.s32.totalorder %v314_v13, %v331_v21  ;;  %vm350_vm8 = vcmp.eq.s32.totalorder %v318_v14, %v331_v21  ;;  %v1097_v36 = vld [vmem:[%s1441_s2] sm:$0xff]   ;;  %s1164_s20 = scalar_lea.vmem %s855_s15, 64  ;;  %s1168_s25 = sshll.u32 %s1241_s26, 4  ;;  %s1169_s25 = int_to_ptr.vmem [resolvable:$false] %s1168_s25 }
  0x44   : > { %983 = vmatprep.subr.msk.bf16.mxu0 %vm982_vm4, %v1239_v27  ;;  %vm992_vm9 = vmpackc.low %vm351_vm3, %vm347_vm2  ;;  %vm337_vm10 = vcmp.eq.s32.totalorder %v305_v16, %v327_v18  ;;  %vm341_vm11 = vcmp.eq.s32.totalorder %v309_v17, %v327_v18  ;;  %vm339_vm13 = vcmp.eq.s32.totalorder %v307_v22, %v335_v19  ;;  %vm343_vm14 = vcmp.eq.s32.totalorder %v311_v24, %v335_v19  ;;  %p1165_p12 = scmp.ne.s32.totalorder %s855_s15, %s1164_s20  ;;  %s1170_s28 = scalar_lea.vmem %s1169_s25, 128 }
  0x45   : > { %993 = vmatprep.subr.msk.bf16.mxu1 %vm992_vm9, %v1239_v27  ;;  %vm984_vm12 = vmpackc.low %vm348_vm6, %vm344_vm5  ;;  %vm336_vm0 = vcmp.eq.s32.totalorder %v304_v25, %v323_v20  ;;  %vm340_vm1 = vcmp.eq.s32.totalorder %v308_v26, %v323_v20  ;;  %vm338_vm3 = vcmp.eq.s32.totalorder %v306_v28, %v331_v21  ;;  %vm342_vm4 = vcmp.eq.s32.totalorder %v310_v29, %v331_v21  ;;  %p1171_p8 = scmp.lt.s32.totalorder %s855_s15, %s1169_s25  ;;  %p1172_p11 = scmp.lt.s32.totalorder %s1170_s28, %s1164_s20 }
  0x46   : > { %985 = vmatpush1.bf16.msk.msra.mxu0 %vm984_vm12, %v1239_v27  ;;  %vm994_vm15 = vmpackc.low %vm350_vm8, %vm346_vm7  ;;  %vm417_vm5 = vcmp.eq.s32.totalorder %v305_v16, %v407_v30  ;;  %vm421_vm6 = vcmp.eq.s32.totalorder %v309_v17, %v407_v30  ;;  %vm419_vm7 = vcmp.eq.s32.totalorder %v307_v22, %v415_v31  ;;  %vm423_vm8 = vcmp.eq.s32.totalorder %v311_v24, %v415_v31  ;;  %p1166_p4 = pnand %p1165_p12, %p1458_p0 }
  0x47   : > { %995 = vmatpush1.bf16.msk.msra.mxu1 %vm994_vm15, %v1239_v27  ;;  %vm986_vm2 = vmpackc.low %vm341_vm11, %vm337_vm10  ;;  %vm458_vm10 = vcmask 261120   ;;  %vm416_vm11 = vcmp.eq.s32.totalorder %v304_v25, %v403_v32  ;;  %p1173_p13 = por %p1172_p11, %p1171_p8 }
  0x48   : > { %987 = vmatprep.subr.msk.bf16.mxu0 %vm986_vm2, %v1239_v27  ;;  %vm996_vm9 = vmpackc.low %vm343_vm14, %vm339_vm13  ;;  %vm420_vm2 = vcmp.eq.s32.totalorder %v308_v26, %v403_v32  ;;  %vm418_vm14 = vcmp.eq.s32.totalorder %v306_v28, %v411_v33  ;;  %p1167_p7 = pneg %p1166_p4 }
  0x49   : > { %997 = vmatprep.subr.msk.bf16.mxu1 %vm996_vm9, %v1239_v27  ;;  %vm988_vm12 = vmpackc.low %vm340_vm1, %vm336_vm0  ;;  %vm422_vm9 = vcmp.eq.s32.totalorder %v310_v29, %v411_v33 }
  0x4a   : > { %989 = vmatpush1.bf16.msk.msra.mxu0 %vm988_vm12, %v1239_v27  ;;  %vm998_vm15 = vmpackc.low %vm342_vm4, %vm338_vm3  ;;  %vm585_vm3 = vcmask 130048   ;;  %vm836_vm4 = vcmp.lt.s32.totalorder %v320_v0, 512  ;;  %p1174_p1 = pnand %p1173_p13, %p1167_p7 }
  0x4b   : > { %999 = vmatpush1.bf16.msk.msra.mxu1 %vm998_vm15, %v1239_v27  ;;  %vm1004_vm13 = vmpackc.low %vm421_vm6, %vm417_vm5 }
  0x4c   : > { %1005 = vmatprep.subr.msk.bf16.mxu0 %vm1004_vm13, %v1239_v27  ;;  %vm1010_vm0 = vmpackc.low %vm423_vm8, %vm419_vm7 }
  0x4d   : > { %990 = vmatmul.mubr.msk.bf16.vlgmr.msra.gmra.mxu0 %vm458_vm10, %v1095_v34  ;;  %1011 = vmatprep.subr.msk.bf16.mxu1 %vm1010_vm0, %v1239_v27  ;;  %vm1006_vm1 = vmpackc.low %vm420_vm2, %vm416_vm11 }
  0x4e   : > { %1000 = vmatmul.mubr.msk.bf16.vlgmr.msra.gmra.mxu1 %vm458_vm10, %v1095_v34  ;;  %1007 = vmatpush1.bf16.msk.msra.mxu0 %vm1006_vm1, %v1239_v27  ;;  %vm1012_vm12 = vmpackc.low %vm422_vm9, %vm418_vm14 }
  0x4f   : > { %1013 = vmatpush1.bf16.msk.msra.mxu1 %vm1012_vm12, %v1239_v27  ;;  %507 = vmatprep.mubr.bf16.mxu0 %v1238_v2 }
  0x50   : > { %560 = vmatprep.mubr.bf16.mxu1 %v1238_v2 }
  0x55   : > { %991 = vmatmul.mubr.msk.bf16.gmra.mxu0 %vm458_vm10, %v1096_v35 }
  0x56   : > { %1001 = vmatmul.mubr.msk.bf16.gmra.mxu1 %vm458_vm10, %v1096_v35  ;;  %624 = vmatprep.mubr.bf16.mxu0 %v1238_v2 }
  0x57   : > { %677 = vmatprep.mubr.bf16.mxu1 %v1238_v2 }
  0x5d   : > { %1008 = vmatmul.mubr.msk.bf16.vlgmr.msra.gmra.mxu0 %vm585_vm3, %v1097_v36 }
  0x5e   : > { %1014 = vmatmul.mubr.msk.bf16.vlgmr.msra.gmra.mxu1 %vm585_vm3, %v1097_v36  ;;  %634 = vmatprep.mubr.bf16.mxu0 %v1238_v2 }
  0x5f   : > { %687 = vmatprep.mubr.bf16.mxu1 %v1238_v2 }
  0x65   : > { %1009 = vmatmul.mubr.msk.bf16.gmra.mxu0 %vm585_vm3, %v1098_v37 }
  0x66   : > { %1015 = vmatmul.mubr.msk.bf16.gmra.mxu1 %vm585_vm3, %v1098_v37 }
 0x10d   : > { %v499_v38 = vpop.f32.mrf.mxu0 }
 0x10e   : > { %v552_v39 = vpop.f32.mrf.mxu1 }
 0x10f   : > { %v501_v40 = vpop.f32.mrf.mxu0 }
 0x110   : > { %v554_v41 = vpop.f32.mrf.mxu1 }
 0x111   : > { %v503_v42 = vpop.f32.mrf.mxu0 }
 0x112   : > { %v556_v43 = vpop.f32.mrf.mxu1 }
 0x113   : > { %v505_v44 = vpop.f32.mrf.mxu0 }
 0x114   : > { %v558_v45 = vpop.f32.mrf.mxu1 }
 0x115   : > { %v509_v46 = vpop.f32.mrf.mxu0 }
 0x116   : > { %v562_v47 = vpop.f32.mrf.mxu1 }
 0x117   : > { %v511_v48 = vpop.f32.mrf.mxu0 }
 0x118   : > { %v564_v49 = vpop.f32.mrf.mxu1 }
 0x119   : > { %v513_v50 = vpop.f32.mrf.mxu0 }
 0x11a   : > { %v566_v51 = vpop.f32.mrf.mxu1 }
 0x11b   : > { %v515_v52 = vpop.f32.mrf.mxu0 }
 0x11c   : > { %v568_v53 = vpop.f32.mrf.mxu1 }
 0x11d   : > { %v626_v54 = vpop.f32.mrf.mxu0 }
 0x11e   : > { %v679_v55 = vpop.f32.mrf.mxu1  ;;  %v698_v3 = vmul.f32 %v626_v54, %v499_v38 }
 0x11f   : > { %v628_v56 = vpop.f32.mrf.mxu0  ;;  %v700_v7 = vmul.f32 %v679_v55, %v552_v39 }
 0x120   : > { %v681_v57 = vpop.f32.mrf.mxu1  ;;  %v699_v11 = vmul.f32 %v628_v56, %v501_v40 }
 0x121   : > { %v630_v58 = vpop.f32.mrf.mxu0  ;;  %v701_v15 = vmul.f32 %v681_v57, %v554_v41 }
 0x122   : > { %v683_v59 = vpop.f32.mrf.mxu1  ;;  %v702_v61 = vmul.f32 %v630_v58, %v503_v42 }
 0x123   : > { %v632_v60 = vpop.f32.mrf.mxu0  ;;  %v704_v63 = vmul.f32 %v683_v59, %v556_v43 }
 0x124   : > { %v685_v62 = vpop.f32.mrf.mxu1  ;;  %v703_v4 = vmul.f32 %v632_v60, %v505_v44  ;;  %v714_v12 = vadd.f32 %v702_v61, %v698_v3  ;;  %v762_v3 = vstv %s299_s29 }
 0x125   : > { %v636_v2 = vpop.f32.mrf.mxu0  ;;  %v705_v8 = vmul.f32 %v685_v62, %v558_v45  ;;  %v732_v16 = vadd.f32 %v704_v63, %v700_v7 }
 0x126   : > { %v706_v5 = vmul.f32 %v636_v2, %v509_v46  ;;  %v689_v6 = vpop.f32.mrf.mxu1  ;;  %v723_v19 = vadd.f32 %v703_v4, %v699_v11  ;;  %v767_v4 = vstv %s954_s9 }
 0x127   : > { %v708_v9 = vmul.f32 %v689_v6, %v562_v47  ;;  %v638_v10 = vpop.f32.mrf.mxu0  ;;  %v741_v23 = vadd.f32 %v705_v8, %v701_v15 }
 0x128   : > { %v707_v13 = vmul.f32 %v638_v10, %v511_v48  ;;  %v691_v14 = vpop.f32.mrf.mxu1  ;;  %v715_v20 = vadd.f32 %v714_v12, %v706_v5 }
 0x129   : > { %v709_v17 = vmul.f32 %v691_v14, %v564_v49  ;;  %v640_v18 = vpop.f32.mrf.mxu0  ;;  %v733_v24 = vadd.f32 %v732_v16, %v708_v9 }
 0x12a   : > { %v710_v21 = vmul.f32 %v640_v18, %v513_v50  ;;  %v693_v22 = vpop.f32.mrf.mxu1  ;;  %v724_v27 = vadd.f32 %v723_v19, %v707_v13  ;;  %v776_v13 = vstv %s955_s10 }
 0x12b   : > { %v712_v25 = vmul.f32 %v693_v22, %v566_v51  ;;  %v642_v26 = vpop.f32.mrf.mxu0  ;;  %v742_v31 = vadd.f32 %v741_v23, %v709_v17 }
 0x12c   : > { %v716_v28 = vadd.f32 %v715_v20, %v710_v21  ;;  %v711_v29 = vmul.f32 %v642_v26, %v515_v52  ;;  %v695_v30 = vpop.f32.mrf.mxu1 }
 0x12d   : > { %v734_v32 = vadd.f32 %v733_v24, %v712_v25  ;;  %v713_v33 = vmul.f32 %v695_v30, %v568_v53 }
 0x12e   : > { %v717_v34 = vrot.slane %v716_v28, 4  ;;  %v725_v35 = vadd.f32 %v724_v27, %v711_v29 }
 0x12f   : > { %v735_v36 = vrot.slane %v734_v32, 4  ;;  %v743_v37 = vadd.f32 %v742_v31, %v713_v33 }
 0x130   : > { %v718_v38 = vadd.f32 %v717_v34, %v716_v28  ;;  %v726_v39 = vrot.slane %v725_v35, 4 }
 0x131   : > { %v736_v40 = vadd.f32 %v735_v36, %v734_v32  ;;  %v744_v41 = vrot.slane %v743_v37, 4 }
 0x132   : > { %v719_v42 = vrot.slane %v718_v38, 2  ;;  %v727_v43 = vadd.f32 %v726_v39, %v725_v35 }
 0x133   : > { %v737_v44 = vrot.slane %v736_v40, 2  ;;  %v745_v45 = vadd.f32 %v744_v41, %v743_v37  ;;  %v1240_v41 = vmov 1966171168  }
 0x134   : > { %v720_v46 = vadd.f32 %v719_v42, %v718_v38  ;;  %v728_v47 = vrot.slane %v727_v43, 2  ;;  %v812_v42 = vunpack.c.l.s4 %v1240_v41 }
 0x135   : > { %v738_v48 = vadd.f32 %v737_v44, %v736_v40  ;;  %v746_v49 = vrot.slane %v745_v45, 2 }
 0x136   : > { %v721_v50 = vrot.slane %v720_v46, 1  ;;  %v729_v51 = vadd.f32 %v728_v47, %v727_v43  ;;  %v813_v43 = vunpack.c.0.s8 %v812_v42 }
 0x137   : > { %v739_v52 = vrot.slane %v738_v48, 1  ;;  %v747_v53 = vadd.f32 %v746_v49, %v745_v45 }
 0x138   : > { %v722_v54 = vadd.f32 %v721_v50, %v720_v46  ;;  %v730_v55 = vrot.slane %v729_v51, 1  ;;  %v816_v46 = vsub.s32 %v813_v43, %v1362_v1 }
 0x139   : > { %v740_v56 = vadd.f32 %v739_v52, %v738_v48  ;;  %v748_v57 = vrot.slane %v747_v53, 1 }
 0x13a   : > { %v1016_v58 = vadd.f32 6.0, %v722_v54  ;;  %v731_v59 = vadd.f32 %v730_v55, %v729_v51 }
 0x13b   : > { %v1018_v60 = vadd.f32 6.0, %v740_v56  ;;  %v749_v61 = vadd.f32 %v748_v57, %v747_v53 }
 0x13c   : > { %1099 = vlog2.f32 %v1016_v58  ;;  %v1017_v62 = vadd.f32 6.0, %v731_v59  ;;  %v768_v11 = vmul.f32 %v1016_v58, %v767_v4 }
 0x13d   : > { %1101 = vlog2.f32 %v1018_v60  ;;  %v1019_v63 = vadd.f32 6.0, %v749_v61  ;;  %v770_v15 = vmul.f32 %v1018_v60, %v767_v4 }
 0x13e   : > { %1103 = vlog2.f32 %v1017_v62  ;;  %v769_v19 = vmul.f32 %v1017_v62, %v767_v4 }
 0x13f   : > { %1105 = vlog2.f32 %v1019_v63  ;;  %v771_v22 = vmul.f32 %v1019_v63, %v767_v4 }
 0x149   : > { %v1100_v2 = vpop.eup %1099 }
 0x14a   : > { %v1102_v5 = vpop.eup %1101  ;;  %v755_v6 = vmul.f32 0.6931472, %v1100_v2 }
 0x14b   : > { %v1104_v7 = vpop.eup %1103  ;;  %v759_v8 = vmul.f32 0.6931472, %v1102_v5 }
 0x14c   : > { %v1106_v9 = vpop.eup %1105  ;;  %v763_v10 = vmul.f32 %v762_v3, %v755_v6  ;;  %v757_v12 = vmul.f32 0.6931472, %v1104_v7 }
 0x14d   : > { %v765_v14 = vmul.f32 %v762_v3, %v759_v8  ;;  %v761_v16 = vmul.f32 0.6931472, %v1106_v9 }
 0x14e   : > { %v772_v17 = vadd.f32 %v768_v11, %v763_v10  ;;  %v764_v18 = vmul.f32 %v762_v3, %v757_v12 }
 0x14f   : > { %v774_v20 = vadd.f32 %v770_v15, %v765_v14  ;;  %v766_v21 = vmul.f32 %v762_v3, %v761_v16 }
 0x150   : > { %v777_v23 = vadd.f32 %v776_v13, %v772_v17  ;;  %v773_v24 = vadd.f32 %v769_v19, %v764_v18 }
 0x151   : > { %v779_v25 = vadd.f32 %v776_v13, %v774_v20  ;;  %v775_v26 = vadd.f32 %v771_v22, %v766_v21 }
 0x152   : > { %v1020_v27 = vmul.f32 -1.442695, %v777_v23  ;;  %v778_v28 = vadd.f32 %v776_v13, %v773_v24 }
 0x153   : > { %v1022_v29 = vmul.f32 -1.442695, %v779_v25  ;;  %v780_v30 = vadd.f32 %v776_v13, %v775_v26 }
 0x154   : > { %1107 = vpow2.f32 %v1020_v27  ;;  %v1021_v31 = vmul.f32 -1.442695, %v778_v28 }
 0x155   : > { %1109 = vpow2.f32 %v1022_v29  ;;  %v1023_v32 = vmul.f32 -1.442695, %v780_v30 }
 0x156   : > { %1111 = vpow2.f32 %v1021_v31 }
 0x157   : > { %1113 = vpow2.f32 %v1023_v32 }
 0x161   : > { %v1108_v33 = vpop.eup %1107 }
 0x162   : > { %v1110_v34 = vpop.eup %1109  ;;  %v793_v35 = vadd.f32 1.0, %v1108_v33 }
 0x163   : > { %v1112_v36 = vpop.eup %1111  ;;  %v795_v37 = vadd.f32 1.0, %v1110_v34 }
 0x164   : > { %v1114_v38 = vpop.eup %1113  ;;  %1115 = vrcp.f32 %v793_v35  ;;  %v794_v39 = vadd.f32 1.0, %v1112_v36 }
 0x165   : > { %1117 = vrcp.f32 %v795_v37  ;;  %v796_v40 = vadd.f32 1.0, %v1114_v38 }
 0x166   : > { %1119 = vrcp.f32 %v794_v39 }
 0x167   : > { %1121 = vrcp.f32 %v796_v40 }
 0x171   : > { %v1116_v44 = vpop.eup %1115 }
 0x172   : > { %v1118_v45 = vpop.eup %1117 }
 0x173   : > { %v1120_v47 = vpop.eup %1119 }
 0x174   : > { %v1122_v48 = vpop.eup %1121  ;;  %v809_v49 = vcombine.low %v1116_v44, %v1120_v47 }
 0x175   : > { %v810_v50 = vcombine.low %v1118_v45, %v1122_v48 }
 0x176   : > { %v817_v51 = vrot.slane %v809_v49, %v816_v46 }
 0x177   : > { %v824_v52 = vrot.slane %v810_v50, %v816_v46 }
 0x179   : > { %v825_v53 = vcombine.low %v817_v51, %v824_v52 }
 0x17b   : > { %v832_v54 = vrot.slane %v825_v53, %v816_v46 }
 0x17d   : > { %838 = vst.msk [vmem:[%s286_s14] sm:$0xf] %vm836_vm4, %v832_v54 }
 0x17e   : > { %1177 = shalt.err (!%p1174_p1)
}
 0x17f   : > { %s1178_s29 = scalar_lea.hbm %s852_s18, 64  ;;  %s1182_s11 = scalar_lea.hbm %s1445_s6, 128 }
 0x180   : > { %p1179_p2 = scmp.ne.s32.totalorder %s852_s18, %s1178_s29  ;;  %p1183_p5 = scmp.lt.s32.totalorder %s852_s18, %s1445_s6 }
 0x181   : > { %p1184_p6 = scmp.lt.s32.totalorder %s1182_s11, %s1178_s29 }
 0x182   : > { %p1180_p3 = pnand %p1179_p2, %p1458_p0 }
 0x183   : > { %p1185_p10 = por %p1184_p6, %p1183_p5 }
 0x184   : > { %p1181_p9 = pneg %p1180_p3 }
 0x186   : > { %p1186_p12 = pnand %p1185_p10, %p1181_p9 }
 0x188   : > { %1189 = shalt.err (!%p1186_p12)
}
 0x189   : > { %1038 = dma.vmem_to_hbm [thread:$0]  (%p1458_p0), %s855_s15, 64, %s852_s18, %s840_s19  }
 0x18a PF: > { %p1055_p4 = scmp.ge.s32.totalorder %s1232_s24, 2  ;;  %s866_s14 = sand.u32 1, %s1220_s21  }
 0x18b   : > { %p1459_p7 = scmp.ne.s32.totalorder %s1450_s8, 0  ;;  %s867_s16 = scalar_lea.sflag [#allocation4], %s866_s14 }
 0x18d   : > { %p1048_p8 = pnand %p1055_p4, %p1459_p7 }
 0x18f   : > { %p1049_p11 = pneg %p1048_p8 }
 0x191   : > { %1215 = dma.done.wait (%p1049_p11), %s867_s16, 64  }
 0x192   : > { %1217 = vsyncadd (%p1049_p11), %s867_s16, 4294967232  ;;  %p18_p13 = scmp.ge.s32.totalorder %s1302_s27, 4   ;;  %s1460_s21 = smov %s1224_s22 }
 0x193   : > { %s1461_s22 = smov %s1228_s23  ;;  %s1462_s23 = smov %s1313_s30 }
 0x194   : > { %s1463_s24 = smov %s1302_s27  ;;  %20 = sbr.rel (!%p18_p13) target bundleno = 5 (0x5), region = 92 }
 0x199   :  { %872 = vsyncpa [#allocation3], 1 }
 0x19a   :  { %874 = vsyncpa [#allocation3 + $0x1], 1 }
 0x19b   :  { %875 = vsyncpa [#allocation4], 1 }
 0x19c   :  { %877 = vsyncpa [#allocation4 + $0x1], 1 }
 0x19d   :  { %878 = vsyncpa [#allocation5], 1 }
 0x19e   :  { %880 = vsyncpa [#allocation5 + $0x1], 1 }

</bundles_post_ra>
